<compile_context>
chip_gen: v6e
topology: v6e:2x2x1
jax: 0.10.0
libtpu: 0.0.40
codegen_flags: <defaults>
</compile_context>

<pallas_src>
import functools

import jax
import jax.numpy as jnp
from jax.experimental import pallas as pl
from jax.experimental.pallas import tpu as pltpu

F_IN, H1, H2, N_OUT = 25, 64, 128, 2
LANE = 128      # lane-dense width for padded hidden layers
OUT_PAD = 8     # narrow padded output width (full-array last dim, legal block)


def _round_up(n, m):
    return ((n + m - 1) // m) * m


def _cdiv(a, b):
    return -(-a // b)


def _mlp_kernel(x_ref, w1_ref, b1_ref, w2_ref, b2_ref, w3_ref, b3_ref, o_ref):
    # One (TB, 25) bf16 batch tile; all weights resident in VMEM (bf16).
    x = x_ref[...]                                                         # [TB, 25] bf16
    h1 = jnp.dot(x, w1_ref[...], preferred_element_type=jnp.float32)       # [TB, 128] f32
    h1 = jnp.maximum(h1 + b1_ref[...], 0.0)                                # ReLU (f32)
    h2 = jnp.dot(h1.astype(jnp.bfloat16), w2_ref[...],
                 preferred_element_type=jnp.float32)                       # [TB, 128] f32
    h2 = jnp.maximum(h2 + b2_ref[...], 0.0)                                # ReLU (f32)
    # Dropout(p=0.2) in eval mode == identity.
    out = jnp.dot(h2.astype(jnp.bfloat16), w3_ref[...],
                  preferred_element_type=jnp.float32)                      # [TB, 8] f32
    o_ref[...] = (out + b3_ref[...]).astype(o_ref.dtype)


def _pad_params(params):
    """Zero-pad to lane-dense shapes and cast weights to bf16.

    w1: [25,64]->[25,128] bf16, b1: [64]->[1,128] f32
    w2: [64,128]->[128,128] bf16 (zero rows for padded hidden units), b2: [128]->[1,128] f32
    w3: [128,2]->[128,8] bf16, b3: [2]->[1,8] f32
    Padding is numerically exact for the first N_OUT output columns.
    """
    w1 = jnp.pad(params["w1"], ((0, 0), (0, LANE - H1))).astype(jnp.bfloat16)
    b1 = jnp.pad(params["b1"].reshape(1, -1), ((0, 0), (0, LANE - H1))).astype(jnp.float32)
    w2 = jnp.pad(params["w2"], ((0, LANE - H1), (0, 0))).astype(jnp.bfloat16)
    b2 = params["b2"].reshape(1, -1).astype(jnp.float32)
    w3 = jnp.pad(params["w3"], ((0, 0), (0, OUT_PAD - N_OUT))).astype(jnp.bfloat16)
    b3 = jnp.pad(params["b3"].reshape(1, -1), ((0, 0), (0, OUT_PAD - N_OUT))).astype(jnp.float32)
    return w1, b1, w2, b2, w3, b3


def _choose_tiling(B, tb):
    """Pick (TB, Bp, num_tiles): TB multiple of 8, >=2 tiles when B>=16 (v7x),
    tiles rebalanced so row padding is at most 8*num_tiles."""
    tb = max(8, _round_up(tb, 8))            # sanitize user tb (e.g. tb=500 -> 504)
    B8 = _round_up(B, 8)
    TB = min(tb, B8)
    if B8 >= 16:
        TB = min(TB, _round_up(_cdiv(B8, 2), 8))   # guarantee >=2 grid steps
    num_tiles = _cdiv(B8, TB)
    TB = _round_up(_cdiv(B8, num_tiles), 8)        # rebalance -> minimal padding
    Bp = TB * num_tiles
    return TB, Bp, num_tiles


@functools.partial(jax.jit, static_argnames=("tb",))
def heart_disease_nn_forward(x, params, *, tb=2048):
    """x: [B, 25] float32; params: w1[25,64], b1[64], w2[64,128], b2[128], w3[128,2], b3[2]."""
    B = x.shape[0]
    TB, Bp, num_tiles = _choose_tiling(B, tb)
    if Bp != B:
        x = jnp.pad(x, ((0, Bp - B), (0, 0)))      # padded rows computed, never read back
    x = x.astype(jnp.bfloat16)                     # bf16 MXU operand, halves x HBM read
    w1, b1, w2, b2, w3, b3 = _pad_params(params)

    out = pl.pallas_call(
        _mlp_kernel,
        out_shape=jax.ShapeDtypeStruct((Bp, OUT_PAD), jnp.float32),
        grid=(num_tiles,),
        in_specs=[
            pl.BlockSpec((TB, F_IN), lambda i: (i, 0)),     # x: streamed per batch tile
            pl.BlockSpec((F_IN, LANE), lambda i: (0, 0)),   # w1: resident
            pl.BlockSpec((1, LANE), lambda i: (0, 0)),      # b1
            pl.BlockSpec((LANE, LANE), lambda i: (0, 0)),   # w2
            pl.BlockSpec((1, LANE), lambda i: (0, 0)),      # b2
            pl.BlockSpec((LANE, OUT_PAD), lambda i: (0, 0)),  # w3 (narrow)
            pl.BlockSpec((1, OUT_PAD), lambda i: (0, 0)),     # b3 (narrow)
        ],
        out_specs=pl.BlockSpec((TB, OUT_PAD), lambda i: (i, 0)),
        compiler_params=pltpu.CompilerParams(
            dimension_semantics=("parallel",)),             # v7x: split batch over 2 TCs
    )(x, w1, b1, w2, b2, w3, b3)

    return out[:B, :N_OUT]


def init_params(key):
    """Deterministic init matching PyTorch nn.Linear default U(-1/sqrt(fan_in), +).
    Weights stored as [in, out] (transpose of PyTorch's [out, in]) so forward is x @ w + b."""
    dims = [(F_IN, H1), (H1, H2), (H2, N_OUT)]
    params = {}
    for i, (fan_in, fan_out) in enumerate(dims, start=1):
        key, kw, kb = jax.random.split(key, 3)
        bound = 1.0 / jnp.sqrt(fan_in)
        params[f"w{i}"] = jax.random.uniform(
            kw, (fan_in, fan_out), jnp.float32, -bound, bound)
        params[f"b{i}"] = jax.random.uniform(
            kb, (fan_out,), jnp.float32, -bound, bound)
    return params


def _reference_f32(x, params):
    h1 = jnp.maximum(x @ params["w1"] + params["b1"], 0.0)
    h2 = jnp.maximum(h1 @ params["w2"] + params["b2"], 0.0)
    return h2 @ params["w3"] + params["b3"]   # dropout(eval) == identity


def _reference_bf16(x, params):
    # Mirrors the kernel's mixed precision: bf16 operands, f32 accumulation.
    bf = jnp.bfloat16
    h1 = jnp.dot(x.astype(bf), params["w1"].astype(bf),
                 preferred_element_type=jnp.float32) + params["b1"]
    h1 = jnp.maximum(h1, 0.0)
    h2 = jnp.dot(h1.astype(bf), params["w2"].astype(bf),
                 preferred_element_type=jnp.float32) + params["b2"]
    h2 = jnp.maximum(h2, 0.0)
    return jnp.dot(h2.astype(bf), params["w3"].astype(bf),
                   preferred_element_type=jnp.float32) + params["b3"]


if __name__ == "__main__":
    key = jax.random.PRNGKey(0)
    key, kx1, kx2 = jax.random.split(key, 3)
    params = init_params(key)

    # Small single-tile case (B=8 -> TB=8, grid=(1,)).
    x_small = jax.random.normal(kx1, (8, F_IN), jnp.float32)
    out_small = heart_disease_nn_forward(x_small, params)
    jax.block_until_ready(out_small)
    assert out_small.shape == (8, N_OUT)
    assert jnp.allclose(out_small, _reference_bf16(x_small, params), atol=2e-2, rtol=2e-2)
    assert jnp.allclose(out_small, _reference_f32(x_small, params), atol=6e-2, rtol=6e-2)

    # Multi-tile case with remainder padding (B=40, tb=16 -> TB=16, Bp=48, grid=(3,)).
    x_multi = jax.random.normal(kx2, (40, F_IN), jnp.float32)
    out_multi = heart_disease_nn_forward(x_multi, params, tb=16)
    jax.block_until_ready(out_multi)
    assert out_multi.shape == (40, N_OUT)
    assert jnp.allclose(out_multi, _reference_bf16(x_multi, params), atol=2e-2, rtol=2e-2)
    assert jnp.allclose(out_multi, _reference_f32(x_multi, params), atol=6e-2, rtol=6e-2)

    print("KERNEL_OK")
</pallas_src>

<mosaic_0001>
module attributes {stable_mosaic.version = 11 : i64} {
  func.func @_mlp_kernel(%arg0: i32, %arg1: memref<8x25xbf16, #tpu.memory_space<vmem>>, %arg2: memref<25x128xbf16, #tpu.memory_space<vmem>>, %arg3: memref<1x128xf32, #tpu.memory_space<vmem>>, %arg4: memref<128x128xbf16, #tpu.memory_space<vmem>>, %arg5: memref<1x128xf32, #tpu.memory_space<vmem>>, %arg6: memref<128x8xbf16, #tpu.memory_space<vmem>>, %arg7: memref<1x8xf32, #tpu.memory_space<vmem>>, %arg8: memref<8x8xf32, #tpu.memory_space<vmem>>) attributes {dimension_semantics = [#tpu.dimension_semantics<parallel>], iteration_bounds = array<i64: 1>, scalar_prefetch = 0 : i64, scratch_operands = 0 : i64, tpu.core_type = #tpu.core_type<tc>, window_params = [{transform_indices = @transform_0, window_bounds = array<i64: 8, 25>}, {pipeline_mode = #tpu.pipeline_mode<synchronous>, transform_indices = @transform_1, window_bounds = array<i64: 25, 128>}, {pipeline_mode = #tpu.pipeline_mode<synchronous>, transform_indices = @transform_2, window_bounds = array<i64: 1, 128>}, {pipeline_mode = #tpu.pipeline_mode<synchronous>, transform_indices = @transform_3, window_bounds = array<i64: 128, 128>}, {pipeline_mode = #tpu.pipeline_mode<synchronous>, transform_indices = @transform_4, window_bounds = array<i64: 1, 128>}, {pipeline_mode = #tpu.pipeline_mode<synchronous>, transform_indices = @transform_5, window_bounds = array<i64: 128, 8>}, {pipeline_mode = #tpu.pipeline_mode<synchronous>, transform_indices = @transform_6, window_bounds = array<i64: 1, 8>}, {transform_indices = @transform_7, window_bounds = array<i64: 8, 8>}]} {
    %c0 = arith.constant 0 : index
    %c0_0 = arith.constant 0 : index
    %0 = vector.load %arg1[%c0, %c0_0] : memref<8x25xbf16, #tpu.memory_space<vmem>>, vector<8x25xbf16>
    %c0_1 = arith.constant 0 : index
    %c0_2 = arith.constant 0 : index
    %1 = vector.load %arg2[%c0_1, %c0_2] : memref<25x128xbf16, #tpu.memory_space<vmem>>, vector<25x128xbf16>
    %cst = arith.constant dense<0.000000e+00> : vector<8x128xf32>
    %2 = tpu.matmul %0, %1, %cst {dimension_numbers = #tpu.dot_dimension_numbers<[1], [0], [0], [1], [0, 0, 1, 1], [], []>} : vector<8x25xbf16>, vector<25x128xbf16>, vector<8x128xf32> -> vector<8x128xf32>
    %c0_3 = arith.constant 0 : index
    %c0_4 = arith.constant 0 : index
    %3 = vector.load %arg3[%c0_3, %c0_4] : memref<1x128xf32, #tpu.memory_space<vmem>>, vector<1x128xf32>
    %4 = vector.broadcast %3 : vector<1x128xf32> to vector<8x128xf32>
    %5 = arith.addf %2, %4 : vector<8x128xf32>
    %cst_5 = arith.constant 0.000000e+00 : f32
    %6 = vector.broadcast %cst_5 : f32 to vector<8x128xf32>
    %7 = arith.maximumf %5, %6 : vector<8x128xf32>
    %8 = arith.truncf %7 : vector<8x128xf32> to vector<8x128xbf16>
    %c0_6 = arith.constant 0 : index
    %c0_7 = arith.constant 0 : index
    %9 = vector.load %arg4[%c0_6, %c0_7] : memref<128x128xbf16, #tpu.memory_space<vmem>>, vector<128x128xbf16>
    %cst_8 = arith.constant dense<0.000000e+00> : vector<8x128xf32>
    %10 = tpu.matmul %8, %9, %cst_8 {dimension_numbers = #tpu.dot_dimension_numbers<[1], [0], [0], [1], [0, 0, 1, 1], [], []>} : vector<8x128xbf16>, vector<128x128xbf16>, vector<8x128xf32> -> vector<8x128xf32>
    %c0_9 = arith.constant 0 : index
    %c0_10 = arith.constant 0 : index
    %11 = vector.load %arg5[%c0_9, %c0_10] : memref<1x128xf32, #tpu.memory_space<vmem>>, vector<1x128xf32>
    %12 = vector.broadcast %11 : vector<1x128xf32> to vector<8x128xf32>
    %13 = arith.addf %10, %12 : vector<8x128xf32>
    %cst_11 = arith.constant 0.000000e+00 : f32
    %14 = vector.broadcast %cst_11 : f32 to vector<8x128xf32>
    %15 = arith.maximumf %13, %14 : vector<8x128xf32>
    %16 = arith.truncf %15 : vector<8x128xf32> to vector<8x128xbf16>
    %c0_12 = arith.constant 0 : index
    %c0_13 = arith.constant 0 : index
    %17 = vector.load %arg6[%c0_12, %c0_13] : memref<128x8xbf16, #tpu.memory_space<vmem>>, vector<128x8xbf16>
    %cst_14 = arith.constant dense<0.000000e+00> : vector<8x8xf32>
    %18 = tpu.matmul %16, %17, %cst_14 {dimension_numbers = #tpu.dot_dimension_numbers<[1], [0], [0], [1], [0, 0, 1, 1], [], []>} : vector<8x128xbf16>, vector<128x8xbf16>, vector<8x8xf32> -> vector<8x8xf32>
    %c0_15 = arith.constant 0 : index
    %c0_16 = arith.constant 0 : index
    %19 = vector.load %arg7[%c0_15, %c0_16] : memref<1x8xf32, #tpu.memory_space<vmem>>, vector<1x8xf32>
    %20 = vector.broadcast %19 : vector<1x8xf32> to vector<8x8xf32>
    %21 = arith.addf %18, %20 : vector<8x8xf32>
    %c0_17 = arith.constant 0 : index
    %c0_18 = arith.constant 0 : index
    %22 = vector.load %arg8[%c0_17, %c0_18] : memref<8x8xf32, #tpu.memory_space<vmem>>, vector<8x8xf32>
    tpu.vector_store %arg8[%c0_17, %c0_18], %21 {strides = array<i32>} : memref<8x8xf32, #tpu.memory_space<vmem>>, vector<8x8xf32>,
    return
  }
  func.func @transform_0(%arg0: i32) -> (i32, i32) {
    %c0_i32 = arith.constant 0 : i32
    %c0_i32_0 = arith.constant 0 : i32
    return %arg0, %c0_i32 : i32, i32
  }
  func.func @transform_1(%arg0: i32) -> (i32, i32) {
    %c0_i32 = arith.constant 0 : i32
    %c0_i32_0 = arith.constant 0 : i32
    %c0_i32_1 = arith.constant 0 : i32
    return %c0_i32, %c0_i32_0 : i32, i32
  }
  func.func @transform_2(%arg0: i32) -> (i32, i32) {
    %c0_i32 = arith.constant 0 : i32
    %c0_i32_0 = arith.constant 0 : i32
    %c0_i32_1 = arith.constant 0 : i32
    return %c0_i32, %c0_i32_0 : i32, i32
  }
  func.func @transform_3(%arg0: i32) -> (i32, i32) {
    %c0_i32 = arith.constant 0 : i32
    %c0_i32_0 = arith.constant 0 : i32
    %c0_i32_1 = arith.constant 0 : i32
    return %c0_i32, %c0_i32_0 : i32, i32
  }
  func.func @transform_4(%arg0: i32) -> (i32, i32) {
    %c0_i32 = arith.constant 0 : i32
    %c0_i32_0 = arith.constant 0 : i32
    %c0_i32_1 = arith.constant 0 : i32
    return %c0_i32, %c0_i32_0 : i32, i32
  }
  func.func @transform_5(%arg0: i32) -> (i32, i32) {
    %c0_i32 = arith.constant 0 : i32
    %c0_i32_0 = arith.constant 0 : i32
    %c0_i32_1 = arith.constant 0 : i32
    return %c0_i32, %c0_i32_0 : i32, i32
  }
  func.func @transform_6(%arg0: i32) -> (i32, i32) {
    %c0_i32 = arith.constant 0 : i32
    %c0_i32_0 = arith.constant 0 : i32
    %c0_i32_1 = arith.constant 0 : i32
    return %c0_i32, %c0_i32_0 : i32, i32
  }
  func.func @transform_7(%arg0: i32) -> (i32, i32) {
    %c0_i32 = arith.constant 0 : i32
    %c0_i32_0 = arith.constant 0 : i32
    return %arg0, %c0_i32 : i32, i32
  }
}

</mosaic_0001>

<bundles_post_ra>
// kernel: heart_disease_nn_forward.1
= control target key start
LH: loop header
LB: loop body
LE: loop exit
PB: predicated region body
PF: predicated region fallthrough
CT: control target
= control target key end

     0   :  { %vm54_vm0 = vcmask 1043456   ;;  %vm55_vm1 = vcmask 1044480   ;;  %v445_v0 = vmov 0.0   ;;  %v446_v2 = vmov 65535   ;;  %s581_s1 = inlined_call_operand.vmem [shape: bf16[25,128], index: 1, kind: input, shape index: {}]   ;;  %s582_s3 = inlined_call_operand.vmem [shape: bf16[128,128], index: 3, kind: input, shape index: {}]   ;;  %s583_s0 = inlined_call_operand.vmem [shape: bf16[8,25], index: 0, kind: input, shape index: {}]   ;;  %s584_s5 = inlined_call_operand.vmem [shape: bf16[128,8], index: 5, kind: input, shape index: {}]   ;;  %s585_s2 = inlined_call_operand.vmem [shape: f32[1,128], index: 2, kind: input, shape index: {}]   ;;  %s586_s4 = inlined_call_operand.vmem [shape: f32[1,128], index: 4, kind: input, shape index: {}]   ;;  %s587_s6 = inlined_call_operand.vmem [shape: f32[1,8], index: 6, kind: input, shape index: {}]   ;;  %s588_s7 = inlined_call_operand.vmem [shape: f32[8,8], index: 7, kind: output, shape index: {}]  }
   0x1   :  { %376 = vmatprep.subr.bf16.mxu0 %v445_v0  ;;  %v427_v1 = vld [vmem:[%s581_s1 + $0x8] sm:$0x1f]   ;;  %384 = vmatprep.subr.bf16.mxu1 %v445_v0  ;;  %v56_v3 = vsel %vm54_vm0, 4294967295, %v446_v2  ;;  %v429_v5 = vld [vmem:[%s582_s3 + $0x38] sm:$0xff]   ;;  %vm447_vm2 = vmmov 0   ;;  %v430_v7 = vld [vmem:[%s582_s3 + $0x30] sm:$0xff]  }
   0x2   :  { %v57_v4 = vsel %vm55_vm1, %v56_v3, 0  ;;  %380 = vmatprep.mubr.msk.bf16.mxu0 %vm447_vm2, %v445_v0  ;;  %400 = vmatprep.mubr.msk.bf16.mxu1 %vm447_vm2, %v445_v0  ;;  %v428_v8 = vld [vmem:[%s581_s1] sm:$0xff]   ;;  %vm50_vm3 = vcmask 203776   ;;  %v431_v10 = vld [vmem:[%s582_s3 + $0x28] sm:$0xff]   ;;  %v433_v12 = vld [vmem:[%s582_s3 + $0x18] sm:$0xff]   ;;  %vm327_vm4 = vcmask 64512  }
   0x3   :  { %v59_v6 = vand.u32 %v427_v1, %v57_v4  ;;  %385 = vmatpush3.bf16.msra.mxu1 %v429_v5  ;;  %v27_v9 = vld [vmem:[%s583_s0] sm:$0xf]  ;;  %v434_v13 = vld [vmem:[%s582_s3 + $0x10] sm:$0xff]   ;;  %v435_v14 = vld [vmem:[%s582_s3 + $0x8] sm:$0xff]  }
   0x4   :  { %386 = vmatprep.subr.bf16.mxu1 %v445_v0  ;;  %v432_v11 = vld [vmem:[%s582_s3 + $0x20] sm:$0xff]   ;;  %v437_v16 = vld [vmem:[%s584_s5 + $0x38] sm:$0xff]   ;;  %v438_v17 = vld [vmem:[%s584_s5 + $0x30] sm:$0xff]  }
   0x5   :  { %377 = vmatpush3.bf16.msra.mxu0 %v59_v6  ;;  %v436_v15 = vld [vmem:[%s582_s3] sm:$0xff]   ;;  %v439_v18 = vld [vmem:[%s584_s5 + $0x28] sm:$0xff]   ;;  %v441_v20 = vld [vmem:[%s584_s5 + $0x18] sm:$0xff]  }
   0x6   :  { %378 = vmatprep.subr.bf16.mxu0 %v445_v0  ;;  %v440_v19 = vld [vmem:[%s584_s5 + $0x20] sm:$0xff]   ;;  %v442_v21 = vld [vmem:[%s584_s5 + $0x10] sm:$0xff]   ;;  %v443_v30 = vld [vmem:[%s584_s5 + $0x8] sm:$0xff]  }
   0x7   :  { %387 = vmatpush3.bf16.msra.mxu1 %v430_v7  ;;  %v333_v22 = vld [vmem:[%s585_s2] ss:$0 sm:$0xff] }
   0x8   :  { %388 = vmatprep.subr.bf16.mxu1 %v445_v0  ;;  %v444_v31 = vld [vmem:[%s584_s5] sm:$0xff]  }
   0x9   :  { %379 = vmatpush3.bf16.msra.mxu0 %v428_v8  ;;  %v337_v32 = vld [vmem:[%s586_s4] ss:$0 sm:$0xff] }
   0xa   :  { %404 = vmatprep.subr.bf16.mxu0 %v445_v0  ;;  %v346_v40 = vld [vmem:[%s587_s6] ss:$0 sm:$0xff] }
   0xb   :  { %389 = vmatpush3.bf16.msra.mxu1 %v431_v10 }
   0xc   :  { %381 = vmatmul.mubr.msk.bf16.vlgmr.msra.gmra.mxu0 %vm50_vm3, %v27_v9  ;;  %390 = vmatprep.subr.bf16.mxu1 %v445_v0 }
   0xd   :  { %420 = vmatprep.mubr.msk.bf16.mxu0 %vm447_vm2, %v445_v0  ;;  %405 = vmatpush3.bf16.msra.mxu0 %v437_v16 }
   0xe   :  { %406 = vmatprep.subr.bf16.mxu0 %v445_v0 }
   0xf   :  { %391 = vmatpush3.bf16.msra.mxu1 %v432_v11 }
  0x10   :  { %392 = vmatprep.subr.bf16.mxu1 %v445_v0 }
  0x11   :  { %407 = vmatpush3.bf16.msra.mxu0 %v438_v17 }
  0x12   :  { %408 = vmatprep.subr.bf16.mxu0 %v445_v0 }
  0x13   :  { %393 = vmatpush3.bf16.msra.mxu1 %v433_v12 }
  0x14   :  { %394 = vmatprep.subr.bf16.mxu1 %v445_v0 }
  0x15   :  { %409 = vmatpush3.bf16.msra.mxu0 %v439_v18 }
  0x16   :  { %410 = vmatprep.subr.bf16.mxu0 %v445_v0 }
  0x17   :  { %395 = vmatpush3.bf16.msra.mxu1 %v434_v13 }
  0x18   :  { %396 = vmatprep.subr.bf16.mxu1 %v445_v0 }
  0x19   :  { %411 = vmatpush3.bf16.msra.mxu0 %v440_v19 }
  0x1a   :  { %412 = vmatprep.subr.bf16.mxu0 %v445_v0 }
  0x1b   :  { %397 = vmatpush3.bf16.msra.mxu1 %v435_v14 }
  0x1c   :  { %398 = vmatprep.subr.bf16.mxu1 %v445_v0 }
  0x1d   :  { %413 = vmatpush3.bf16.msra.mxu0 %v441_v20 }
  0x1e   :  { %414 = vmatprep.subr.bf16.mxu0 %v445_v0 }
  0x1f   :  { %399 = vmatpush3.bf16.msra.mxu1 %v436_v15 }
  0x21   :  { %415 = vmatpush3.bf16.msra.mxu0 %v442_v21 }
  0x22   :  { %416 = vmatprep.subr.bf16.mxu0 %v445_v0 }
  0x25   :  { %417 = vmatpush3.bf16.msra.mxu0 %v443_v30 }
  0x26   :  { %418 = vmatprep.subr.bf16.mxu0 %v445_v0 }
  0x29   :  { %419 = vmatpush3.bf16.msra.mxu0 %v444_v31 }
  0xcc   :  { %v95_v23 = vpop.f32.mrf.mxu0 }
  0xcd   :  { %v96_v24 = vadd.f32 %v333_v22, %v95_v23 }
  0xce   :  { %v382_v25 = vpop.f32.mrf.mxu0 }
  0xcf   :  { %v101_v26 = vmax.f32 %v96_v24, 0.0 }
  0xd0   :  { %v98_v27 = vpop.f32.mrf.mxu0 }
  0xd1   :  { %v102_v28 = vpack.c.bf16 %v101_v26, %v101_v26 }
  0xd2   :  { %v383_v29 = vpop.f32.mrf.mxu0 }
  0xd3   :  { %401 = vmatmul.mubr.bf16.vlgmr.msra.gmra.mxu1 %v102_v28 }
 0x193   :  { %v208_v33 = vpop.f32.mrf.mxu1 }
 0x194   :  { %v209_v34 = vadd.f32 %v337_v32, %v208_v33 }
 0x195   :  { %v402_v35 = vpop.f32.mrf.mxu1 }
 0x196   :  { %v214_v36 = vmax.f32 %v209_v34, 0.0 }
 0x197   :  { %v211_v37 = vpop.f32.mrf.mxu1 }
 0x198   :  { %v215_v38 = vpack.c.bf16 %v214_v36, %v214_v36 }
 0x199   :  { %v403_v39 = vpop.f32.mrf.mxu1 }
 0x19a   :  { %421 = vmatmul.mubr.bf16.vlgmr.msra.gmra.mxu0 %v215_v38 }
 0x25a   :  { %v321_v41 = vpop.f32.mrf.mxu0 }
 0x25b   :  { %v322_v42 = vadd.f32 %v346_v40, %v321_v41 }
 0x25c   :  { %v422_v43 = vpop.f32.mrf.mxu0 }
 0x25d   :  { %328 = vst.msk [vmem:[%s588_s7] sm:$0xff] %vm327_vm4, %v322_v42 }
 0x25e   :  { %v324_v44 = vpop.f32.mrf.mxu0 }
 0x260   :  { %v423_v45 = vpop.f32.mrf.mxu0 }

</bundles_post_ra>
